<compile_context>
chip_gen: v5e
topology: v5e:2x2
jax: 0.10.0
libtpu: 0.0.40
codegen_flags: <defaults>
</compile_context>

<pallas_src>
import functools

import jax
import jax.numpy as jnp
from jax.experimental import pallas as pl
from jax.experimental.pallas import tpu as pltpu


def _round_up(x, m):
    return (x + m - 1) // m * m


def patch_embed_kernel(x_ref, w_ref, b_ref, o_ref):
    # x_ref: (TM, K) patch rows; w_ref: (K, Np); b_ref: (1, Np) f32; o_ref: (TM, Np).
    acc = jnp.dot(x_ref[...], w_ref[...], preferred_element_type=jnp.float32)
    o_ref[...] = (acc + b_ref[...]).astype(o_ref.dtype)


def patch_embedding_pallas(x, weight, bias, patch_size, *,
                           compute_dtype=jnp.bfloat16, block_m=512):
    """x: (B, C, H, W) NCHW. weight: (E, C, ps, ps). bias: (E,).
    Returns (B, num_patches, E) in x.dtype. Pass compute_dtype=jnp.float32 for exact f32."""
    B, C, H, W = x.shape
    E = weight.shape[0]
    ps = patch_size
    assert H % ps == 0 and W % ps == 0, "H and W must be divisible by patch_size"
    Hp, Wp = H // ps, W // ps
    num_patches = Hp * Wp

    out_dtype = x.dtype
    K = C * ps * ps
    M = B * num_patches

    # Host-side patch extraction: a single fused transpose+cast (half-size im2col buffer).
    # Channel-major within a patch matches Conv2d's (out, in, kh, kw) weight layout;
    # row-major over (hp, wp) matches Conv2d's output HW order.
    # TODO(synk): fold patch extraction into the x BlockSpec (block (1, C, ps, W) with an
    # in-kernel lane split W -> (Wp, ps)) to remove this extra HBM pass; kept host-side
    # here for robust Mosaic lowering.
    patches = x.reshape(B, C, Hp, ps, Wp, ps)
    patches = patches.transpose(0, 2, 4, 1, 3, 5)            # (B, Hp, Wp, C, ps, ps)
    patches = patches.reshape(M, K).astype(compute_dtype)    # (M, K)

    w_mat = weight.reshape(E, K).T.astype(compute_dtype)     # (K, E)
    b_row = bias.reshape(1, E).astype(jnp.float32)           # (1, E)

    # Lane-dense output: pad E up to a multiple of 128 so stores are unmasked vst.
    Np = _round_up(E, 128)
    if Np != E:
        w_mat = jnp.pad(w_mat, ((0, 0), (0, Np - E)))
        b_row = jnp.pad(b_row, ((0, 0), (0, Np - E)))

    # Tile M; large tiles amortize the ~0.35us per-grid-step overhead.
    TM = block_m if M >= block_m else _round_up(M, 8)
    Mp = _round_up(M, TM)
    if Mp != M:
        patches = jnp.pad(patches, ((0, Mp - M), (0, 0)))
    grid = (Mp // TM,)

    # VMEM budget: double-buffered input/output tiles + resident weight/bias (+ headroom).
    in_b = jnp.dtype(compute_dtype).itemsize
    out_b = jnp.dtype(out_dtype).itemsize
    vmem_bytes = (2 * (TM * K * in_b + TM * Np * out_b)
                  + 2 * K * Np * in_b + 2 * Np * 4)
    vmem_limit = int(max(2 * vmem_bytes, 16 * 1024 * 1024))

    cost = pl.CostEstimate(
        flops=2 * Mp * K * Np,
        transcendentals=0,
        bytes_accessed=Mp * K * in_b + K * Np * in_b + Np * 4 + Mp * Np * out_b,
    )

    out = pl.pallas_call(
        patch_embed_kernel,
        out_shape=jax.ShapeDtypeStruct((Mp, Np), out_dtype),
        grid_spec=pltpu.PrefetchScalarGridSpec(
            num_scalar_prefetch=0,
            grid=grid,
            in_specs=[
                pl.BlockSpec((TM, K), lambda i: (i, 0)),    # patch-row tile
                pl.BlockSpec((K, Np), lambda i: (0, 0)),    # weight, VMEM-resident
                pl.BlockSpec((1, Np), lambda i: (0, 0)),    # bias, VMEM-resident
            ],
            out_specs=pl.BlockSpec((TM, Np), lambda i: (i, 0)),
        ),
        compiler_params=pltpu.CompilerParams(
            dimension_semantics=("parallel",),   # independent M tiles; v7x dual-TC sharding
            vmem_limit_bytes=vmem_limit,
        ),
        cost_estimate=cost,
    )(patches, w_mat, b_row)

    return out[:M, :E].reshape(B, num_patches, E)


def patch_embedding_ref(x, weight, bias, patch_size):
    """Pure-JAX reference mirroring nn.Conv2d(stride=kernel_size) + flatten/permute."""
    y = jax.lax.conv_general_dilated(
        x, weight,
        window_strides=(patch_size, patch_size),
        padding="VALID",
        dimension_numbers=("NCHW", "OIHW", "NCHW"),
    ) + bias.reshape(1, -1, 1, 1)
    B, C, H, W = y.shape
    return y.reshape(B, C, H * W).transpose(0, 2, 1)


if __name__ == "__main__":
    # Module defaults: in_channels=1, embed_dim=32, patch_size=4.
    B, C, H, W = 2, 1, 16, 16
    embed_dim, patch_size = 32, 4

    key = jax.random.PRNGKey(0)
    kx, kw, kb = jax.random.split(key, 3)

    x = jax.random.normal(kx, (B, C, H, W), dtype=jnp.float32)
    weight = jax.random.normal(kw, (embed_dim, C, patch_size, patch_size),
                               dtype=jnp.float32) * 0.1
    bias = jax.random.normal(kb, (embed_dim,), dtype=jnp.float32) * 0.1

    fn = jax.jit(functools.partial(patch_embedding_pallas, patch_size=patch_size))
    out = fn(x, weight, bias)
    out = jax.block_until_ready(out)

    ref = patch_embedding_ref(x, weight, bias, patch_size)
    assert out.shape == (B, (H // patch_size) * (W // patch_size), embed_dim)
    # bf16 MXU inputs with f32 accumulation: tolerance loosened vs the pure-f32 reference.
    assert jnp.allclose(out, ref, atol=3e-2, rtol=3e-2), \
        float(jnp.max(jnp.abs(out - ref)))

    print("KERNEL_OK")
</pallas_src>

<mosaic_0001>
module attributes {stable_mosaic.version = 11 : i64} {
  func.func @patch_embed_kernel(%arg0: i32, %arg1: memref<32x16xbf16, #tpu.memory_space<vmem>>, %arg2: memref<16x128xbf16, #tpu.memory_space<vmem>>, %arg3: memref<1x128xf32, #tpu.memory_space<vmem>>, %arg4: memref<32x128xf32, #tpu.memory_space<vmem>>) attributes {dimension_semantics = [#tpu.dimension_semantics<parallel>], iteration_bounds = array<i64: 1>, scalar_prefetch = 0 : i64, scratch_operands = 0 : i64, tpu.core_type = #tpu.core_type<tc>, window_params = [{transform_indices = @transform_0, window_bounds = array<i64: 32, 16>}, {pipeline_mode = #tpu.pipeline_mode<synchronous>, transform_indices = @transform_1, window_bounds = array<i64: 16, 128>}, {pipeline_mode = #tpu.pipeline_mode<synchronous>, transform_indices = @transform_2, window_bounds = array<i64: 1, 128>}, {transform_indices = @transform_3, window_bounds = array<i64: 32, 128>}]} {
    %c0 = arith.constant 0 : index
    %c0_0 = arith.constant 0 : index
    %0 = vector.load %arg1[%c0, %c0_0] : memref<32x16xbf16, #tpu.memory_space<vmem>>, vector<32x16xbf16>
    %c0_1 = arith.constant 0 : index
    %c0_2 = arith.constant 0 : index
    %1 = vector.load %arg2[%c0_1, %c0_2] : memref<16x128xbf16, #tpu.memory_space<vmem>>, vector<16x128xbf16>
    %cst = arith.constant dense<0.000000e+00> : vector<32x128xf32>
    %2 = tpu.matmul %0, %1, %cst {dimension_numbers = #tpu.dot_dimension_numbers<[1], [0], [0], [1], [0, 0, 1, 1], [], []>} : vector<32x16xbf16>, vector<16x128xbf16>, vector<32x128xf32> -> vector<32x128xf32>
    %c0_3 = arith.constant 0 : index
    %c0_4 = arith.constant 0 : index
    %3 = vector.load %arg3[%c0_3, %c0_4] : memref<1x128xf32, #tpu.memory_space<vmem>>, vector<1x128xf32>
    %4 = vector.broadcast %3 : vector<1x128xf32> to vector<32x128xf32>
    %5 = arith.addf %2, %4 : vector<32x128xf32>
    %c0_5 = arith.constant 0 : index
    %c0_6 = arith.constant 0 : index
    %6 = vector.load %arg4[%c0_5, %c0_6] : memref<32x128xf32, #tpu.memory_space<vmem>>, vector<32x128xf32>
    tpu.vector_store %arg4[%c0_5, %c0_6], %5 {strides = array<i32>} : memref<32x128xf32, #tpu.memory_space<vmem>>, vector<32x128xf32>,
    return
  }
  func.func @transform_0(%arg0: i32) -> (i32, i32) {
    %c0_i32 = arith.constant 0 : i32
    %c0_i32_0 = arith.constant 0 : i32
    return %arg0, %c0_i32 : i32, i32
  }
  func.func @transform_1(%arg0: i32) -> (i32, i32) {
    %c0_i32 = arith.constant 0 : i32
    %c0_i32_0 = arith.constant 0 : i32
    %c0_i32_1 = arith.constant 0 : i32
    return %c0_i32, %c0_i32_0 : i32, i32
  }
  func.func @transform_2(%arg0: i32) -> (i32, i32) {
    %c0_i32 = arith.constant 0 : i32
    %c0_i32_0 = arith.constant 0 : i32
    %c0_i32_1 = arith.constant 0 : i32
    return %c0_i32, %c0_i32_0 : i32, i32
  }
  func.func @transform_3(%arg0: i32) -> (i32, i32) {
    %c0_i32 = arith.constant 0 : i32
    %c0_i32_0 = arith.constant 0 : i32
    return %arg0, %c0_i32 : i32, i32
  }
}

</mosaic_0001>

<bundles_post_ra>
// kernel: patch_embedding_pallas.1
= control target key start
LH: loop header
LB: loop body
LE: loop exit
PB: predicated region body
PF: predicated region fallthrough
CT: control target
= control target key end

     0   :  { %s176_s0 = inlined_call_operand.vmem [shape: bf16[32,16], index: 0, kind: input, shape index: {}]   ;;  %s177_s1 = inlined_call_operand.vmem [shape: bf16[16,128], index: 1, kind: input, shape index: {}]   ;;  %s178_s2 = inlined_call_operand.vmem [shape: f32[1,128], index: 2, kind: input, shape index: {}]   ;;  %s179_s3 = inlined_call_operand.hbm [shape: f32[32,128], index: 3, kind: output, shape index: {}]  }
   0x1   :  { %v106_v0 = vld [vmem:[%s177_s1] sm:$0xff]  ;;  %v105_v2 = vld [vmem:[%s176_s0 + $0x8] sm:$0xff] }
   0x2   :  { %v104_v1 = vld [vmem:[%s176_s0] sm:$0xff] }
   0x3   :  { %8 = vsyncpa [#allocation3], 0  ;;  %56 = vmatpush.bf16.msra.mxu0 %v106_v0  ;;  %107 = vmatpush.bf16.msra.mxu1 %v106_v0  ;;  %vm42_vm0 = vcmask 130048   ;;  %v111_v3 = vld [vmem:[%s178_s2] ss:$0 sm:$0xff]  ;;  %s138_s1 = smov [#allocation2]  }
   0x4   :  { %s76_s20 = sshll.u32 %s138_s1, 4  ;;  %s78_s22 = sshll.u32 %s179_s3, 4  ;;  %s77_s20 = int_to_ptr.vmem [resolvable:$true] %s76_s20  ;;  %s79_s22 = int_to_ptr.hbm [resolvable:$true] %s78_s22 }
   0x5   :  { %s139_s2 = smov 128   ;;  %s140_s23 = smov 8  }
   0x6   :  { %102 = vmatmul.msk.bf16.vlgmr.msra.gmra.mxu0 %vm42_vm0, %v104_v1  ;;  %103 = vmatmul.msk.bf16.vlgmr.msra.gmra.mxu1 %vm42_vm0, %v105_v2 }
  0x83   :  { %v58_v4 = vpop.f32.mrf.mxu0  ;;  %v63_v5 = vpop.f32.mrf.mxu1 }
  0x84   :  { %v59_v6 = vadd.f32 %v111_v3, %v58_v4  ;;  %v64_v7 = vadd.f32 %v111_v3, %v63_v5 }
  0x86   :  { %68 = vst [vmem:[#allocation2] sm:$0xff] %v59_v6 }
  0x87   :  { %70 = vst [vmem:[#allocation2 + $0x10] sm:$0xff] %v64_v7 }
  0x8b   :  { %v60_v8 = vpop.f32.mrf.mxu0  ;;  %v65_v9 = vpop.f32.mrf.mxu1 }
  0x8c   :  { %v61_v10 = vadd.f32 %v111_v3, %v60_v8  ;;  %v66_v11 = vadd.f32 %v111_v3, %v65_v9 }
  0x8e   :  { %69 = vst [vmem:[#allocation2 + $0x8] sm:$0xff] %v61_v10 }
  0x8f   :  { %71 = vst [vmem:[#allocation2 + $0x18] sm:$0xff] %v66_v11 }
  0x90   :  { %84 = dma.vmem_to_hbm [thread:$0]  %s77_s20, 512, %s79_s22, [#allocation3], %s139_s2, %s139_s2, %s140_s23  }
  0x91   :  { %136 = dma.done.wait [#allocation3], 512  }
  0x92   :  { %137 = vsyncadd [#allocation3], 4294966784 }
  0x93   :  { %89 = vsyncpa [#allocation3], 1 }

</bundles_post_ra>
